<compile_context>
chip_gen: v6e
topology: v6e:2x2x1
jax: 0.10.0
libtpu: 0.0.40
codegen_flags: <defaults>
</compile_context>

<pallas_src>
import functools

import jax
import jax.numpy as jnp
from jax import lax
from jax.experimental import pallas as pl
from jax.experimental.pallas import tpu as pltpu


def _lane_group_sum(v, lane_mode):
    """Sum 128-lane column groups: (rows, k*128) -> (rows, 128).

    Each slice is a whole 128-lane-aligned column block (one vreg column), so
    the tree of adds is pure VPU work; no per-step XLU cross-lane reduce.
    Falls back to a direct reduce for tiny single-tile batches.
    """
    if not lane_mode:
        return jnp.sum(v, axis=1, keepdims=True)
    cols = v.shape[1]
    parts = [v[:, g * 128:(g + 1) * 128] for g in range(cols // 128)]
    while len(parts) > 1:
        nxt = [parts[i] + parts[i + 1] for i in range(0, len(parts) - 1, 2)]
        if len(parts) % 2 == 1:
            nxt.append(parts[-1])
        parts = nxt
    return parts[0]


def _sublane_group_sum(d2, mse_groups, dy):
    """Sum row groups of 8: (tile_b, dy) -> (8, dy)  (or (1, 1) fallback).

    The (tile_b, dy) -> (tile_b//8, 8, dy) reshape regroups whole sublane
    tiles (layout preserving); the axis-0 reduce is cross-vreg VPU adds.
    """
    if mse_groups == 0:
        return jnp.sum(d2, keepdims=True)
    if mse_groups == 1:
        return d2
    return jnp.sum(d2.reshape(mse_groups, 8, dy), axis=0)


def _alm_loss_kernel(x_ref, pred_ref, target_ref, a_ref, bmat_ref, bvec_ref,
                     lam_ref, mse_ref, lc_ref, c2h_ref,
                     d2_acc, cs_acc, c2_acc,
                     *, n_steps, tile_b, rem, mse_groups, lane_mode, dy,
                     inv_mse, inv_lc, half_inv_c2):
    step = pl.program_id(0)

    @pl.when(step == 0)
    def _init():
        d2_acc[...] = jnp.zeros_like(d2_acc)
        cs_acc[...] = jnp.zeros_like(cs_acc)
        c2_acc[...] = jnp.zeros_like(c2_acc)

    pred = pred_ref[...]
    diff = pred.astype(jnp.float32) - target_ref[...].astype(jnp.float32)

    # c = A @ X_tile^T + B @ pred_tile^T - b, laid out (nc, tile_b) so the big
    # batch axis stays on lanes (contract last-last, flash-attn Q.K^T form).
    dims = (((1,), (1,)), ((), ()))
    c = (lax.dot_general(a_ref[...], x_ref[...], dims,
                         preferred_element_type=jnp.float32)
         + lax.dot_general(bmat_ref[...], pred, dims,
                           preferred_element_type=jnp.float32)
         - bvec_ref[...])

    def _accumulate(d, cc):
        d2_acc[...] += _sublane_group_sum(d * d, mse_groups, dy)
        cs_acc[...] += _lane_group_sum(cc, lane_mode)
        c2_acc[...] += _lane_group_sum(cc * cc, lane_mode)

    if rem == tile_b:                      # batch divides evenly: never mask
        _accumulate(diff, c)
    else:
        @pl.when(step < n_steps - 1)       # full interior tiles: no mask cost
        def _full_tiles():
            _accumulate(diff, c)

        @pl.when(step == n_steps - 1)      # only the last tile is ragged
        def _last_tile():
            rows = lax.broadcasted_iota(jnp.int32, (tile_b, 1), 0)
            cols = lax.broadcasted_iota(jnp.int32, (1, tile_b), 1)
            _accumulate(jnp.where(rows < rem, diff, 0.0),
                        jnp.where(cols < rem, c, 0.0))

    @pl.when(step == n_steps - 1)
    def _finalize():
        mse_ref[...] = jnp.sum(d2_acc[...], keepdims=True) * inv_mse
        csum = jnp.sum(cs_acc[...], axis=1, keepdims=True)           # (nc, 1)
        lc_ref[...] = jnp.sum(lam_ref[...] * csum, keepdims=True) * inv_lc
        c2h_ref[...] = jnp.sum(c2_acc[...], keepdims=True) * half_inv_c2


def alm_loss(X, pred, target, lambda_k, mu_k, A, B, b, *, max_tile_rows=None):
    """Returns (mse_loss, lambda_c + mu_c), both scalars, matching ALMLoss."""
    X = jnp.asarray(X)
    pred = jnp.asarray(pred)
    target = jnp.asarray(target)
    batch, dx = X.shape
    dy = pred.shape[1]
    A_arr = jnp.asarray(A)
    nc = A_arr.shape[0]

    itemsize = max(jnp.dtype(X.dtype).itemsize, jnp.dtype(pred.dtype).itemsize,
                   jnp.dtype(target.dtype).itemsize)
    lane_pad = lambda d: -(-d // 128) * 128
    sub_pad = lambda d: -(-d // 8) * 8

    # Per-generation scoped-VMEM limit and streaming budget (headroom left for
    # Mosaic internal scratch / estimation error).
    try:
        kind = jax.devices()[0].device_kind.lower()
    except Exception:
        kind = ""
    if "v7" in kind or "7x" in kind:
        vmem_limit, budget = 44 * 1024 * 1024, 30 * 1024 * 1024   # 64 MiB / TC
    elif "v5" in kind or "v6" in kind:
        vmem_limit, budget = 96 * 1024 * 1024, 68 * 1024 * 1024   # 128 MiB
    else:
        vmem_limit, budget = None, 10 * 1024 * 1024               # stay safe

    # VMEM bytes per batch row: double-buffered X/pred/target blocks
    # (lane-padded to 128) + live f32 temporaries (loaded values, diff, and the
    # (nc, tile_b) constraint residual).
    row_bytes = 2 * (lane_pad(dx) + 2 * lane_pad(dy)) * itemsize
    row_bytes += (lane_pad(dx) + 3 * lane_pad(dy) + 4 * sub_pad(nc)) * 4
    const_bytes = 4 * sub_pad(nc) * (lane_pad(dx) + lane_pad(dy) + 2 * 128) * 4

    tile_b = (budget - const_bytes) // max(1, row_bytes)
    tile_b = max(8, min(tile_b, 8192))
    if max_tile_rows is not None:
        tile_b = max(1, min(tile_b, int(max_tile_rows)))
    if tile_b >= batch:
        tile_b = batch                     # one full-extent block, no overhang
        n_steps = 1
    else:
        tile_b = (tile_b // 128) * 128 if tile_b >= 128 else (tile_b // 8) * 8
        tile_b = max(tile_b, 8)
        n_steps = -(-batch // tile_b)
    rem = batch - (n_steps - 1) * tile_b   # valid rows in the last tile

    mse_groups = tile_b // 8 if tile_b % 8 == 0 else 0
    lane_mode = (tile_b % 128 == 0)
    d2_shape = (8, dy) if mse_groups else (1, 1)
    acc_w = 128 if lane_mode else 1

    # Tiny parameters: match the MXU operand dtypes; reductions stay f32.
    A_m = A_arr.astype(X.dtype).reshape(nc, dx)
    B_m = jnp.asarray(B).astype(pred.dtype).reshape(nc, dy)
    b_col = jnp.asarray(b, jnp.float32).reshape(nc, 1)
    lam_col = jnp.asarray(lambda_k, jnp.float32).reshape(nc, 1)
    mu = jnp.asarray(mu_k, jnp.float32)

    kernel = functools.partial(
        _alm_loss_kernel,
        n_steps=n_steps, tile_b=tile_b, rem=rem,
        mse_groups=mse_groups, lane_mode=lane_mode, dy=dy,
        inv_mse=1.0 / float(batch * dy),
        inv_lc=1.0 / float(batch),
        half_inv_c2=0.5 / float(batch * nc))

    batch_map = lambda i: (i, 0)
    const_map = lambda i: (0, 0)

    grid_spec = pltpu.PrefetchScalarGridSpec(
        num_scalar_prefetch=0,
        grid=(n_steps,),
        in_specs=[
            pl.BlockSpec((tile_b, dx), batch_map),   # X tile
            pl.BlockSpec((tile_b, dy), batch_map),   # pred tile
            pl.BlockSpec((tile_b, dy), batch_map),   # target tile
            pl.BlockSpec((nc, dx), const_map),       # A  (VMEM-resident)
            pl.BlockSpec((nc, dy), const_map),       # B
            pl.BlockSpec((nc, 1), const_map),        # b
            pl.BlockSpec((nc, 1), const_map),        # lambda_k
        ],
        out_specs=(
            pl.BlockSpec((1, 1), const_map),         # mean(diff^2)
            pl.BlockSpec((1, 1), const_map),         # lambda_c
            pl.BlockSpec((1, 1), const_map),         # mean(c^2) / 2
        ),
        scratch_shapes=[
            pltpu.VMEM(d2_shape, jnp.float32),
            pltpu.VMEM((nc, acc_w), jnp.float32),
            pltpu.VMEM((nc, acc_w), jnp.float32),
        ],
    )

    flops = 2 * batch * nc * (dx + dy) + 3 * batch * dy
    bytes_accessed = (batch * (dx + 2 * dy) * itemsize
                      + nc * (dx + dy + 2) * 4 + 3 * 4)
    cost = pl.CostEstimate(flops=flops, transcendentals=0,
                           bytes_accessed=bytes_accessed)

    cp_kwargs = dict(dimension_semantics=("arbitrary",))
    if vmem_limit is not None:
        cp_kwargs["vmem_limit_bytes"] = vmem_limit

    mse_o, lc_o, c2h_o = pl.pallas_call(
        kernel,
        grid_spec=grid_spec,
        out_shape=(jax.ShapeDtypeStruct((1, 1), jnp.float32),
                   jax.ShapeDtypeStruct((1, 1), jnp.float32),
                   jax.ShapeDtypeStruct((1, 1), jnp.float32)),
        compiler_params=pltpu.CompilerParams(**cp_kwargs),
        cost_estimate=cost,
    )(X, pred, target, A_m, B_m, b_col, lam_col)

    mse = mse_o[0, 0]
    alm = lc_o[0, 0] + mu * c2h_o[0, 0]
    return mse, alm


def _reference(X, pred, target, lambda_k, mu_k, A, B, b):
    mse = jnp.mean((pred - target) ** 2)
    c = A @ X.T + B @ pred.T - jnp.tile(b, (1, X.shape[0]))
    lambda_c = jnp.mean(lambda_k[None, :] @ c)
    mu_c = mu_k / 2.0 * jnp.mean(c ** 2)
    return mse, lambda_c + mu_c


if __name__ == "__main__":
    def _run_case(batch, dx, dy, nc, max_tile_rows=None):
        key = jax.random.PRNGKey(0)
        kx, kp, kt, kl, ka, kb, kbv = jax.random.split(key, 7)
        X = jax.random.normal(kx, (batch, dx), jnp.float32)
        pred = jax.random.normal(kp, (batch, dy), jnp.float32)
        target = jax.random.normal(kt, (batch, dy), jnp.float32)
        lambda_k = jax.random.normal(kl, (nc,), jnp.float32)
        mu_k = jnp.float32(1.5)
        A = jax.random.normal(ka, (nc, dx), jnp.float32) * 0.1
        B = jax.random.normal(kb, (nc, dy), jnp.float32) * 0.1
        b = jax.random.normal(kbv, (nc, 1), jnp.float32) * 0.1

        mse, alm = alm_loss(X, pred, target, lambda_k, mu_k, A, B, b,
                            max_tile_rows=max_tile_rows)
        jax.block_until_ready((mse, alm))

        mse_r, alm_r = _reference(X, pred, target, lambda_k, mu_k, A, B, b)
        assert jnp.allclose(mse, mse_r, rtol=1e-4, atol=1e-5), (batch, mse, mse_r)
        assert jnp.allclose(alm, alm_r, rtol=1e-4, atol=1e-5), (batch, alm, alm_r)

    # Tiny single-tile case (full-extent block, scalar-fallback accumulators).
    _run_case(batch=8, dx=32, dy=16, nc=8)
    # Multi-tile case with a ragged last tile: exercises in-kernel masking,
    # the 128-lane-group accumulators and multi-step accumulation.
    _run_case(batch=1003, dx=32, dy=16, nc=5, max_tile_rows=256)

    print("KERNEL_OK")
</pallas_src>

<mosaic_0001>
module attributes {stable_mosaic.version = 11 : i64} {
  func.func @_alm_loss_kernel(%arg0: i32, %arg1: memref<8x32xf32, #tpu.memory_space<vmem>>, %arg2: memref<8x16xf32, #tpu.memory_space<vmem>>, %arg3: memref<8x16xf32, #tpu.memory_space<vmem>>, %arg4: memref<8x32xf32, #tpu.memory_space<vmem>>, %arg5: memref<8x16xf32, #tpu.memory_space<vmem>>, %arg6: memref<8x1xf32, #tpu.memory_space<vmem>>, %arg7: memref<8x1xf32, #tpu.memory_space<vmem>>, %arg8: memref<1x1xf32, #tpu.memory_space<vmem>>, %arg9: memref<1x1xf32, #tpu.memory_space<vmem>>, %arg10: memref<1x1xf32, #tpu.memory_space<vmem>>, %arg11: memref<8x16xf32, #tpu.memory_space<vmem>>, %arg12: memref<8x1xf32, #tpu.memory_space<vmem>>, %arg13: memref<8x1xf32, #tpu.memory_space<vmem>>) attributes {dimension_semantics = [#tpu.dimension_semantics<arbitrary>], iteration_bounds = array<i64: 1>, scalar_prefetch = 0 : i64, scratch_operands = 3 : i64, tpu.core_type = #tpu.core_type<tc>, window_params = [{transform_indices = @transform_0, window_bounds = array<i64: 8, 32>}, {transform_indices = @transform_1, window_bounds = array<i64: 8, 16>}, {transform_indices = @transform_2, window_bounds = array<i64: 8, 16>}, {pipeline_mode = #tpu.pipeline_mode<synchronous>, transform_indices = @transform_3, window_bounds = array<i64: 8, 32>}, {pipeline_mode = #tpu.pipeline_mode<synchronous>, transform_indices = @transform_4, window_bounds = array<i64: 8, 16>}, {pipeline_mode = #tpu.pipeline_mode<synchronous>, transform_indices = @transform_5, window_bounds = array<i64: 8, 1>}, {pipeline_mode = #tpu.pipeline_mode<synchronous>, transform_indices = @transform_6, window_bounds = array<i64: 8, 1>}, {pipeline_mode = #tpu.pipeline_mode<synchronous>, transform_indices = @transform_7, window_bounds = array<i64: 1, 1>}, {pipeline_mode = #tpu.pipeline_mode<synchronous>, transform_indices = @transform_8, window_bounds = array<i64: 1, 1>}, {pipeline_mode = #tpu.pipeline_mode<synchronous>, transform_indices = @transform_9, window_bounds = array<i64: 1, 1>}]} {
    %c0_i32 = arith.constant 0 : i32
    %0 = arith.cmpi eq, %arg0, %c0_i32 : i32
    %1 = arith.extui %0 : i1 to i32
    %c0_i32_0 = arith.constant 0 : i32
    %2 = arith.cmpi ne, %1, %c0_i32_0 : i32
    scf.if %2 {
      %cst_29 = arith.constant 0.000000e+00 : f32
      %33 = vector.broadcast %cst_29 : f32 to vector<8x16xf32>
      %c0_30 = arith.constant 0 : index
      %c0_31 = arith.constant 0 : index
      %34 = vector.load %arg11[%c0_30, %c0_31] : memref<8x16xf32, #tpu.memory_space<vmem>>, vector<8x16xf32>
      tpu.vector_store %arg11[%c0_30, %c0_31], %33 {strides = array<i32>} : memref<8x16xf32, #tpu.memory_space<vmem>>, vector<8x16xf32>,
      %cst_32 = arith.constant 0.000000e+00 : f32
      %35 = vector.broadcast %cst_32 : f32 to vector<8x1xf32>
      %c0_33 = arith.constant 0 : index
      %c0_34 = arith.constant 0 : index
      %36 = vector.load %arg12[%c0_33, %c0_34] : memref<8x1xf32, #tpu.memory_space<vmem>>, vector<8x1xf32>
      tpu.vector_store %arg12[%c0_33, %c0_34], %35 {strides = array<i32>} : memref<8x1xf32, #tpu.memory_space<vmem>>, vector<8x1xf32>,
      %cst_35 = arith.constant 0.000000e+00 : f32
      %37 = vector.broadcast %cst_35 : f32 to vector<8x1xf32>
      %c0_36 = arith.constant 0 : index
      %c0_37 = arith.constant 0 : index
      %38 = vector.load %arg13[%c0_36, %c0_37] : memref<8x1xf32, #tpu.memory_space<vmem>>, vector<8x1xf32>
      tpu.vector_store %arg13[%c0_36, %c0_37], %37 {strides = array<i32>} : memref<8x1xf32, #tpu.memory_space<vmem>>, vector<8x1xf32>,
    } else {
    }
    %c0 = arith.constant 0 : index
    %c0_1 = arith.constant 0 : index
    %3 = vector.load %arg2[%c0, %c0_1] : memref<8x16xf32, #tpu.memory_space<vmem>>, vector<8x16xf32>
    %c0_2 = arith.constant 0 : index
    %c0_3 = arith.constant 0 : index
    %4 = vector.load %arg3[%c0_2, %c0_3] : memref<8x16xf32, #tpu.memory_space<vmem>>, vector<8x16xf32>
    %5 = arith.subf %3, %4 : vector<8x16xf32>
    %c0_4 = arith.constant 0 : index
    %c0_5 = arith.constant 0 : index
    %6 = vector.load %arg4[%c0_4, %c0_5] : memref<8x32xf32, #tpu.memory_space<vmem>>, vector<8x32xf32>
    %c0_6 = arith.constant 0 : index
    %c0_7 = arith.constant 0 : index
    %7 = vector.load %arg1[%c0_6, %c0_7] : memref<8x32xf32, #tpu.memory_space<vmem>>, vector<8x32xf32>
    %cst = arith.constant dense<0.000000e+00> : vector<8x8xf32>
    %8 = tpu.matmul %6, %7, %cst {dimension_numbers = #tpu.dot_dimension_numbers<[1], [1], [0], [0], [0, 0, 1, 0], [], []>} : vector<8x32xf32>, vector<8x32xf32>, vector<8x8xf32> -> vector<8x8xf32>
    %c0_8 = arith.constant 0 : index
    %c0_9 = arith.constant 0 : index
    %9 = vector.load %arg5[%c0_8, %c0_9] : memref<8x16xf32, #tpu.memory_space<vmem>>, vector<8x16xf32>
    %cst_10 = arith.constant dense<0.000000e+00> : vector<8x8xf32>
    %10 = tpu.matmul %9, %3, %cst_10 {dimension_numbers = #tpu.dot_dimension_numbers<[1], [1], [0], [0], [0, 0, 1, 0], [], []>} : vector<8x16xf32>, vector<8x16xf32>, vector<8x8xf32> -> vector<8x8xf32>
    %11 = arith.addf %8, %10 : vector<8x8xf32>
    %c0_11 = arith.constant 0 : index
    %c0_12 = arith.constant 0 : index
    %12 = vector.load %arg6[%c0_11, %c0_12] : memref<8x1xf32, #tpu.memory_space<vmem>>, vector<8x1xf32>
    %13 = vector.broadcast %12 : vector<8x1xf32> to vector<8x8xf32>
    %14 = arith.subf %11, %13 : vector<8x8xf32>
    %c0_13 = arith.constant 0 : index
    %c0_14 = arith.constant 0 : index
    %15 = vector.load %arg11[%c0_13, %c0_14] : memref<8x16xf32, #tpu.memory_space<vmem>>, vector<8x16xf32>
    %16 = arith.mulf %5, %5 : vector<8x16xf32>
    %17 = arith.addf %15, %16 : vector<8x16xf32>
    %c0_15 = arith.constant 0 : index
    %c0_16 = arith.constant 0 : index
    %18 = vector.load %arg11[%c0_15, %c0_16] : memref<8x16xf32, #tpu.memory_space<vmem>>, vector<8x16xf32>
    tpu.vector_store %arg11[%c0_15, %c0_16], %17 {strides = array<i32>} : memref<8x16xf32, #tpu.memory_space<vmem>>, vector<8x16xf32>,
    %c0_17 = arith.constant 0 : index
    %c0_18 = arith.constant 0 : index
    %19 = vector.load %arg12[%c0_17, %c0_18] : memref<8x1xf32, #tpu.memory_space<vmem>>, vector<8x1xf32>
    %cst_19 = arith.constant dense<0.000000e+00> : vector<8xf32>
    %20 = vector.multi_reduction <add>, %14, %cst_19 [1] : vector<8x8xf32> to vector<8xf32>
    %21 = vector.shape_cast %20 : vector<8xf32> to vector<8x1xf32>
    %22 = arith.addf %19, %21 : vector<8x1xf32>
    %c0_20 = arith.constant 0 : index
    %c0_21 = arith.constant 0 : index
    %23 = vector.load %arg12[%c0_20, %c0_21] : memref<8x1xf32, #tpu.memory_space<vmem>>, vector<8x1xf32>
    tpu.vector_store %arg12[%c0_20, %c0_21], %22 {strides = array<i32>} : memref<8x1xf32, #tpu.memory_space<vmem>>, vector<8x1xf32>,
    %c0_22 = arith.constant 0 : index
    %c0_23 = arith.constant 0 : index
    %24 = vector.load %arg13[%c0_22, %c0_23] : memref<8x1xf32, #tpu.memory_space<vmem>>, vector<8x1xf32>
    %25 = arith.mulf %14, %14 : vector<8x8xf32>
    %cst_24 = arith.constant dense<0.000000e+00> : vector<8xf32>
    %26 = vector.multi_reduction <add>, %25, %cst_24 [1] : vector<8x8xf32> to vector<8xf32>
    %27 = vector.shape_cast %26 : vector<8xf32> to vector<8x1xf32>
    %28 = arith.addf %24, %27 : vector<8x1xf32>
    %c0_25 = arith.constant 0 : index
    %c0_26 = arith.constant 0 : index
    %29 = vector.load %arg13[%c0_25, %c0_26] : memref<8x1xf32, #tpu.memory_space<vmem>>, vector<8x1xf32>
    tpu.vector_store %arg13[%c0_25, %c0_26], %28 {strides = array<i32>} : memref<8x1xf32, #tpu.memory_space<vmem>>, vector<8x1xf32>,
    %c0_i32_27 = arith.constant 0 : i32
    %30 = arith.cmpi eq, %arg0, %c0_i32_27 : i32
    %31 = arith.extui %30 : i1 to i32
    %c0_i32_28 = arith.constant 0 : i32
    %32 = arith.cmpi ne, %31, %c0_i32_28 : i32
    scf.if %32 {
      %c0_29 = arith.constant 0 : index
      %c0_30 = arith.constant 0 : index
      %33 = vector.load %arg11[%c0_29, %c0_30] : memref<8x16xf32, #tpu.memory_space<vmem>>, vector<8x16xf32>
      %34 = vector.shape_cast %33 : vector<8x16xf32> to vector<1x8x16xf32>
      %cst_31 = arith.constant dense<0.000000e+00> : vector<1xf32>
      %35 = vector.multi_reduction <add>, %34, %cst_31 [1, 2] : vector<1x8x16xf32> to vector<1xf32>
      %36 = vector.shape_cast %35 : vector<1xf32> to vector<1x1x1xf32>
      %37 = vector.extract %36[0, 0, 0] : f32 from vector<1x1x1xf32>
      %38 = vector.broadcast %37 : f32 to vector<1x1xf32>
      %cst_32 = arith.constant 7.812500e-03 : f32
      %39 = vector.broadcast %cst_32 : f32 to vector<1x1xf32>
      %40 = arith.mulf %38, %39 : vector<1x1xf32>
      %c0_33 = arith.constant 0 : index
      %c0_34 = arith.constant 0 : index
      %41 = vector.load %arg8[%c0_33, %c0_34] : memref<1x1xf32, #tpu.memory_space<vmem>>, vector<1x1xf32>
      tpu.vector_store %arg8[%c0_33, %c0_34], %40 {strides = array<i32>} : memref<1x1xf32, #tpu.memory_space<vmem>>, vector<1x1xf32>,
      %c0_35 = arith.constant 0 : index
      %c0_36 = arith.constant 0 : index
      %42 = vector.load %arg12[%c0_35, %c0_36] : memref<8x1xf32, #tpu.memory_space<vmem>>, vector<8x1xf32>
      %cst_37 = arith.constant dense<0.000000e+00> : vector<8xf32>
      %43 = vector.multi_reduction <add>, %42, %cst_37 [1] : vector<8x1xf32> to vector<8xf32>
      %44 = vector.shape_cast %43 : vector<8xf32> to vector<8x1xf32>
      %c0_38 = arith.constant 0 : index
      %c0_39 = arith.constant 0 : index
      %45 = vector.load %arg7[%c0_38, %c0_39] : memref<8x1xf32, #tpu.memory_space<vmem>>, vector<8x1xf32>
      %46 = arith.mulf %45, %44 : vector<8x1xf32>
      %47 = vector.shape_cast %46 : vector<8x1xf32> to vector<1x8x1xf32>
      %cst_40 = arith.constant dense<0.000000e+00> : vector<1xf32>
      %48 = vector.multi_reduction <add>, %47, %cst_40 [1, 2] : vector<1x8x1xf32> to vector<1xf32>
      %49 = vector.shape_cast %48 : vector<1xf32> to vector<1x1x1xf32>
      %50 = vector.extract %49[0, 0, 0] : f32 from vector<1x1x1xf32>
      %51 = vector.broadcast %50 : f32 to vector<1x1xf32>
      %cst_41 = arith.constant 1.250000e-01 : f32
      %52 = vector.broadcast %cst_41 : f32 to vector<1x1xf32>
      %53 = arith.mulf %51, %52 : vector<1x1xf32>
      %c0_42 = arith.constant 0 : index
      %c0_43 = arith.constant 0 : index
      %54 = vector.load %arg9[%c0_42, %c0_43] : memref<1x1xf32, #tpu.memory_space<vmem>>, vector<1x1xf32>
      tpu.vector_store %arg9[%c0_42, %c0_43], %53 {strides = array<i32>} : memref<1x1xf32, #tpu.memory_space<vmem>>, vector<1x1xf32>,
      %c0_44 = arith.constant 0 : index
      %c0_45 = arith.constant 0 : index
      %55 = vector.load %arg13[%c0_44, %c0_45] : memref<8x1xf32, #tpu.memory_space<vmem>>, vector<8x1xf32>
      %56 = vector.shape_cast %55 : vector<8x1xf32> to vector<1x8x1xf32>
      %cst_46 = arith.constant dense<0.000000e+00> : vector<1xf32>
      %57 = vector.multi_reduction <add>, %56, %cst_46 [1, 2] : vector<1x8x1xf32> to vector<1xf32>
      %58 = vector.shape_cast %57 : vector<1xf32> to vector<1x1x1xf32>
      %59 = vector.extract %58[0, 0, 0] : f32 from vector<1x1x1xf32>
      %60 = vector.broadcast %59 : f32 to vector<1x1xf32>
      %cst_47 = arith.constant 7.812500e-03 : f32
      %61 = vector.broadcast %cst_47 : f32 to vector<1x1xf32>
      %62 = arith.mulf %60, %61 : vector<1x1xf32>
      %c0_48 = arith.constant 0 : index
      %c0_49 = arith.constant 0 : index
      %63 = vector.load %arg10[%c0_48, %c0_49] : memref<1x1xf32, #tpu.memory_space<vmem>>, vector<1x1xf32>
      tpu.vector_store %arg10[%c0_48, %c0_49], %62 {strides = array<i32>} : memref<1x1xf32, #tpu.memory_space<vmem>>, vector<1x1xf32>,
    } else {
    }
    return
  }
  func.func @transform_0(%arg0: i32) -> (i32, i32) {
    %c0_i32 = arith.constant 0 : i32
    %c0_i32_0 = arith.constant 0 : i32
    return %arg0, %c0_i32 : i32, i32
  }
  func.func @transform_1(%arg0: i32) -> (i32, i32) {
    %c0_i32 = arith.constant 0 : i32
    %c0_i32_0 = arith.constant 0 : i32
    return %arg0, %c0_i32 : i32, i32
  }
  func.func @transform_2(%arg0: i32) -> (i32, i32) {
    %c0_i32 = arith.constant 0 : i32
    %c0_i32_0 = arith.constant 0 : i32
    return %arg0, %c0_i32 : i32, i32
  }
  func.func @transform_3(%arg0: i32) -> (i32, i32) {
    %c0_i32 = arith.constant 0 : i32
    %c0_i32_0 = arith.constant 0 : i32
    %c0_i32_1 = arith.constant 0 : i32
    return %c0_i32, %c0_i32_0 : i32, i32
  }
  func.func @transform_4(%arg0: i32) -> (i32, i32) {
    %c0_i32 = arith.constant 0 : i32
    %c0_i32_0 = arith.constant 0 : i32
    %c0_i32_1 = arith.constant 0 : i32
    return %c0_i32, %c0_i32_0 : i32, i32
  }
  func.func @transform_5(%arg0: i32) -> (i32, i32) {
    %c0_i32 = arith.constant 0 : i32
    %c0_i32_0 = arith.constant 0 : i32
    %c0_i32_1 = arith.constant 0 : i32
    return %c0_i32, %c0_i32_0 : i32, i32
  }
  func.func @transform_6(%arg0: i32) -> (i32, i32) {
    %c0_i32 = arith.constant 0 : i32
    %c0_i32_0 = arith.constant 0 : i32
    %c0_i32_1 = arith.constant 0 : i32
    return %c0_i32, %c0_i32_0 : i32, i32
  }
  func.func @transform_7(%arg0: i32) -> (i32, i32) {
    %c0_i32 = arith.constant 0 : i32
    %c0_i32_0 = arith.constant 0 : i32
    %c0_i32_1 = arith.constant 0 : i32
    return %c0_i32, %c0_i32_0 : i32, i32
  }
  func.func @transform_8(%arg0: i32) -> (i32, i32) {
    %c0_i32 = arith.constant 0 : i32
    %c0_i32_0 = arith.constant 0 : i32
    %c0_i32_1 = arith.constant 0 : i32
    return %c0_i32, %c0_i32_0 : i32, i32
  }
  func.func @transform_9(%arg0: i32) -> (i32, i32) {
    %c0_i32 = arith.constant 0 : i32
    %c0_i32_0 = arith.constant 0 : i32
    %c0_i32_1 = arith.constant 0 : i32
    return %c0_i32, %c0_i32_0 : i32, i32
  }
}

</mosaic_0001>

<bundles_post_ra>
// kernel: tpu_custom_call.1
= control target key start
LH: loop header
LB: loop body
LE: loop exit
PB: predicated region body
PF: predicated region fallthrough
CT: control target
= control target key end

     0   :  { %15 = vsyncpa [#allocation6], 0  ;;  %s585_s0 = inlined_call_operand.vmem [shape: f32[8,32], index: 0, kind: input, shape index: {}]   ;;  %s586_s1 = inlined_call_operand.vmem [shape: f32[8,16], index: 1, kind: input, shape index: {}]   ;;  %s587_s2 = inlined_call_operand.hbm [shape: f32[8,16], index: 2, kind: input, shape index: {}]   ;;  %s588_s3 = inlined_call_operand.hbm [shape: f32[8,32], index: 3, kind: input, shape index: {}]   ;;  %s589_s4 = inlined_call_operand.vmem [shape: f32[8,16], index: 4, kind: input, shape index: {}]   ;;  %s590_s5 = inlined_call_operand.vmem [shape: f32[8,1], index: 5, kind: input, shape index: {}]   ;;  %s591_s6 = inlined_call_operand.vmem [shape: f32[8,1], index: 6, kind: input, shape index: {}]   ;;  %s592_s7 = inlined_call_operand.hbm [shape: f32[1,1], index: 7, kind: output, shape index: {0}]   ;;  %s593_s8 = inlined_call_operand.hbm [shape: f32[1,1], index: 8, kind: output, shape index: {1}]   ;;  %s594_s9 = inlined_call_operand.hbm [shape: f32[1,1], index: 9, kind: output, shape index: {2}]  }
   0x1   :  { %16 = vsyncpa [#allocation9], 0 }
   0x2   :  { %17 = vsyncpa [#allocation7], 0 }
   0x3   :  { %18 = vsyncpa [#allocation12], 0  ;;  %s483_s30 = smov [#allocation5]   ;;  %s484_s11 = smov [#allocation8]  }
   0x4   :  { %s29_s10 = sshll.u32 %s483_s30, 4  ;;  %s39_s12 = sshll.u32 %s484_s11, 4  ;;  %s30_s10 = int_to_ptr.vmem [resolvable:$true] %s29_s10  ;;  %s40_s12 = int_to_ptr.vmem [resolvable:$true] %s39_s12 }
   0x5   :  { %s383_s13 = scalar_lea.vmem %s30_s10, 128  ;;  %p388_p1 = scmp.lt.s32.totalorder %s30_s10, %s30_s10 }
   0x6   :  { %p384_p0 = scmp.ne.s32.totalorder %s30_s10, %s383_s13  ;;  %p389_p2 = scmp.lt.s32.totalorder %s383_s13, %s383_s13 }
   0x8   :  { %p390_p3 = por %p389_p2, %p388_p1 }
   0xa   :  { %p391_p4 = pnand %p390_p3, %p384_p0 }
   0xc   :  { %394 = shalt.err (!%p391_p4)
}
   0xd   :  { %32 = dma.hbm_to_vmem [thread:$0]  %s587_s2, 128, %s30_s10, [#allocation6]  }
   0xe   :  { %s403_s16 = scalar_lea.vmem %s40_s12, 128  ;;  %p408_p6 = scmp.lt.s32.totalorder %s40_s12, %s40_s12 }
   0xf   :  { %p404_p5 = scmp.ne.s32.totalorder %s40_s12, %s403_s16  ;;  %p409_p7 = scmp.lt.s32.totalorder %s403_s16, %s403_s16 }
  0x11   :  { %p410_p8 = por %p409_p7, %p408_p6 }
  0x13   :  { %p411_p9 = pnand %p410_p8, %p404_p5 }
  0x15   :  { %414 = shalt.err (!%p411_p9)
}
  0x16   :  { %42 = dma.hbm_to_vmem [thread:$0]  %s588_s3, 128, %s40_s12, [#allocation9]  }
  0x17   :  { %475 = dma.done.wait [#allocation6], 128  }
  0x18   :  { %476 = vsyncadd [#allocation6], 4294967168 }
  0x19   :  { %477 = dma.done.wait [#allocation9], 128  }
  0x1a   :  { %478 = vsyncadd [#allocation9], 4294967168  ;;  %vm59_vm0 = vcmask 130048   ;;  %v485_v0 = vmov 0.0   ;;  %vm486_vm1 = vmmov 0   ;;  %v487_v1 = vmov 0  }
  0x1b   :  { %350 = vmatprep.subr.mxu0 %v485_v0  ;;  %355 = vmatprep.subr.mxu1 %v485_v0  ;;  %60 = vst.msk [vmem:[#allocation2] sm:$0xff] %vm59_vm0, %v485_v0  ;;  %vm147_vm2 = vcmask 261120   ;;  %v64_v2 = vld [vmem:[%s586_s1] sm:$0xff]  ;;  %v65_v3 = vld [vmem:[#allocation5] sm:$0xff]  ;;  %vm61_vm3 = vcmask 7168   ;;  %vm236_vm4 = vcmask 64512  }
  0x1c   :  { %352 = vmatprep.mubr.msk.f32.mxu0 %vm486_vm1, %v485_v0  ;;  %357 = vmatprep.mubr.msk.f32.mxu1 %vm486_vm1, %v485_v0  ;;  %v68_v4 = vld [vmem:[%s585_s0] sm:$0xff]  ;;  %v66_v5 = vsub.f32 %v64_v2, %v65_v3  ;;  %62 = vst.msk [vmem:[#allocation3] sm:$0xff] %vm61_vm3, %v485_v0  ;;  %63 = vst.msk [vmem:[#allocation4] sm:$0xff] %vm61_vm3, %v485_v0  ;;  %vm266_vm5 = vcmask 0  }
  0x1d   :  { %374 = vset.pattern.permute.xlu0 %v487_v1  ;;  %351 = vmatpush3.xpose.msk.msra.mxu0 %vm59_vm0, %v64_v2  ;;  %v69_v6 = vld [vmem:[%s589_s4] sm:$0xff] }
  0x1e   :  { %356 = vmatpush3.xpose.msk.msra.mxu1 %vm147_vm2, %v68_v4  ;;  %v67_v7 = vld [vmem:[#allocation8] sm:$0xff]  ;;  %v232_v10 = vmul.f32 %v66_v5, %v66_v5 }
  0x1f   :  { %v224_v9 = vld [vmem:[%s590_s5] sm:$0xff]  ;;  %s488_s5 = smov [#allocation10]  }
  0x20   :  { %227 = vperm.xlu0 %374, %v224_v9   ;;  %353 = vmatmul.mubr.msk.f32.vlgmr.msra.gmra.mxu0 %vm59_vm0, %v69_v6  ;;  %v270_v30 = vld [vmem:[%s591_s6] sm:$0xff]  ;;  %s305_s6 = sshll.u32 %s488_s5, 4  ;;  %s306_s6 = int_to_ptr.vmem [resolvable:$true] %s305_s6 }
  0x21   :  { %358 = vmatmul.mubr.msk.f32.vlgmr.msra.gmra.mxu1 %vm147_vm2, %v67_v7  ;;  %s415_s25 = scalar_lea.vmem %s306_s6, 16  ;;  %s419_s26 = scalar_lea.vmem %s306_s6, 32 }
  0x22   :  { %v231_v8 = vld [vmem:[#allocation2] sm:$0xff]  ;;  %p416_p10 = scmp.ne.s32.totalorder %s306_s6, %s415_s25  ;;  %p420_p11 = scmp.lt.s32.totalorder %s306_s6, %s306_s6 }
  0x23   :  { %v233_v11 = vadd.f32 %v232_v10, %v231_v8  ;;  %v235_v24 = vld [vmem:[#allocation3] sm:$0xff]  ;;  %v243_v26 = vld [vmem:[#allocation4] sm:$0xff]  ;;  %p421_p12 = scmp.lt.s32.totalorder %s419_s26, %s415_s25 }
  0x25   :  { %234 = vst.msk [vmem:[#allocation2] sm:$0xff] %vm59_vm0, %v233_v11  ;;  %p422_p13 = por %p421_p12, %p420_p11 }
  0x27   :  { %p423_p0 = pnand %p422_p13, %p416_p10 }
  0x2c   :  { %v253_v22 = vld [vmem:[#allocation2] sm:$0xff] }
  0x2d   :  { %v254_v23 = vsel %vm59_vm0, %v253_v22, 0.0 }
  0x9b   :  { %v228_v12 = vpop.permute.xlu0 %227 }
  0xe0   :  { %v143_v13 = vpop.f32.mrf.mxu0 }
  0xe1   :  { %v220_v14 = vpop.f32.mrf.mxu1 }
  0xe2   :  { %v221_v15 = vadd.f32 %v220_v14, %v143_v13  ;;  %v354_v16 = vpop.f32.mrf.mxu0 }
  0xe3   :  { %v359_v17 = vpop.f32.mrf.mxu1 }
  0xe4   :  { %v230_v18 = vsub.f32 %v221_v15, %v228_v12 }
  0xe6   :  { %v237_v19 = vsel %vm236_vm4, %v230_v18, 0.0  ;;  %v244_v20 = vmul.f32 %v230_v18, %v230_v18 }
  0xe7   :  { %238 = vadd.xlane.f32.xlu0 %v237_v19 }
  0xe8   :  { %v245_v21 = vsel %vm236_vm4, %v244_v20, 0.0 }
  0xe9   :  { %246 = vadd.xlane.f32.xlu1 %v245_v21 }
  0xed   :  { %255 = vadd.xlane.f32.xlu1 %v254_v23 }
 0x170   :  { %v239_v25 = vpop.xlane.xlu0 %238 }
 0x171   :  { %v240_v27 = vadd.f32 %v239_v25, %v235_v24 }
 0x172   :  { %v247_v28 = vpop.xlane.xlu1 %246 }
 0x173   :  { %242 = vst.msk [vmem:[#allocation3] sm:$0xff] %vm61_vm3, %v240_v27  ;;  %v248_v29 = vadd.f32 %v247_v28, %v243_v26 }
 0x175   :  { %249 = vst.msk [vmem:[#allocation4] sm:$0xff] %vm61_vm3, %v248_v29 }
 0x176   :  { %v256_v34 = vpop.xlane.xlu1 %255 }
 0x177   :  { %v257_v36 = vrot.slane %v256_v34, 4 }
 0x179   :  { %v258_v37 = vadd.f32 %v257_v36, %v256_v34 }
 0x17a   :  { %v268_v31 = vld [vmem:[#allocation3] sm:$0xff] }
 0x17b   :  { %v271_v32 = vmul.f32 %v270_v30, %v268_v31  ;;  %v259_v39 = vrot.slane %v258_v37, 2 }
 0x17c   :  { %v285_v35 = vld [vmem:[#allocation4] sm:$0xff] }
 0x17d   :  { %v272_v33 = vsel %vm61_vm3, %v271_v32, 0.0  ;;  %v286_v38 = vsel %vm61_vm3, %v285_v35, 0.0  ;;  %v260_v40 = vadd.f32 %v259_v39, %v258_v37 }
 0x17e   :  { %273 = vadd.xlane.f32.xlu1 %v272_v33 }
 0x17f   :  { %v261_v41 = vrot.slane %v260_v40, 1 }
 0x181   :  { %v262_v42 = vadd.f32 %v261_v41, %v260_v40 }
 0x182   :  { %287 = vadd.xlane.f32.xlu1 %v286_v38 }
 0x183   :  { %360 = vpush %v262_v42 }
 0x1b4   :  { %s361_s4 = spop %360 }
 0x1b5   :  { %v264_v43 = vstv %s361_s4 }
 0x1b6   :  { %v265_v44 = vmul.f32 0.0078125, %v264_v43 }
 0x1b8   :  { %267 = vst.msk [vmem:[#allocation10] sm:$0x1] %vm266_vm5, %v265_v44 }
 0x1b9   :  { %426 = shalt.err (!%p423_p0)
}
 0x1ba   :  { %308 = dma.vmem_to_hbm [thread:$0]  %s306_s6, 16, %s592_s7, [#allocation7]  }
 0x1bb   :  { %s489_s29 = smov [#allocation11]   ;;  %s490_s7 = smov [#allocation13]  }
 0x1bc   :  { %s315_s30 = sshll.u32 %s489_s29, 4  ;;  %s325_s11 = sshll.u32 %s490_s7, 4  ;;  %s316_s30 = int_to_ptr.vmem [resolvable:$true] %s315_s30  ;;  %s326_s11 = int_to_ptr.vmem [resolvable:$true] %s325_s11 }
 0x1bd   :  { %s435_s13 = scalar_lea.vmem %s316_s30, 16  ;;  %s439_s14 = scalar_lea.vmem %s316_s30, 32 }
 0x1be   :  { %p436_p1 = scmp.ne.s32.totalorder %s316_s30, %s435_s13  ;;  %p440_p2 = scmp.lt.s32.totalorder %s316_s30, %s316_s30 }
 0x1bf   :  { %p441_p3 = scmp.lt.s32.totalorder %s439_s14, %s435_s13 }
 0x1c1   :  { %p442_p4 = por %p441_p3, %p440_p2 }
 0x1c3   :  { %p443_p5 = pnand %p442_p4, %p436_p1 }
 0x207   :  { %v274_v45 = vpop.xlane.xlu1 %273 }
 0x208   :  { %v275_v46 = vrot.slane %v274_v45, 4 }
 0x20a   :  { %v276_v47 = vadd.f32 %v275_v46, %v274_v45 }
 0x20b   :  { %v288_v48 = vpop.xlane.xlu1 %287 }
 0x20c   :  { %v277_v49 = vrot.slane %v276_v47, 2  ;;  %v289_v50 = vrot.slane %v288_v48, 4 }
 0x20e   :  { %v290_v51 = vadd.f32 %v289_v50, %v288_v48  ;;  %v278_v52 = vadd.f32 %v277_v49, %v276_v47 }
 0x210   :  { %v291_v53 = vrot.slane %v290_v51, 2  ;;  %v279_v54 = vrot.slane %v278_v52, 1 }
 0x212   :  { %v292_v55 = vadd.f32 %v291_v53, %v290_v51  ;;  %v280_v56 = vadd.f32 %v279_v54, %v278_v52 }
 0x214   :  { %362 = vpush %v280_v56  ;;  %v293_v57 = vrot.slane %v292_v55, 1 }
 0x216   :  { %v294_v58 = vadd.f32 %v293_v57, %v292_v55 }
 0x218   :  { %364 = vpush %v294_v58 }
 0x245   :  { %s363_s10 = spop %362 }
 0x246   :  { %v282_v59 = vstv %s363_s10 }
 0x247   :  { %v283_v60 = vmul.f32 0.125, %v282_v59 }
 0x249   :  { %s365_s12 = spop %364  ;;  %284 = vst.msk [vmem:[#allocation11] sm:$0x1] %vm266_vm5, %v283_v60 }
 0x24a   :  { %v296_v61 = vstv %s365_s12 }
 0x24b   :  { %446 = shalt.err (!%p443_p5)
}
 0x24c   :  { %318 = dma.vmem_to_hbm [thread:$0]  %s316_s30, 16, %s593_s8, [#allocation12]   ;;  %v297_v62 = vmul.f32 0.0078125, %v296_v61 }
 0x24d   :  { %s455_s17 = scalar_lea.vmem %s326_s11, 16  ;;  %s459_s18 = scalar_lea.vmem %s326_s11, 32 }
 0x24e   :  { %298 = vst.msk [vmem:[#allocation13] sm:$0x1] %vm266_vm5, %v297_v62  ;;  %p456_p6 = scmp.ne.s32.totalorder %s326_s11, %s455_s17  ;;  %p460_p7 = scmp.lt.s32.totalorder %s326_s11, %s326_s11 }
 0x24f   :  { %p461_p8 = scmp.lt.s32.totalorder %s459_s18, %s455_s17 }
 0x251   :  { %p462_p9 = por %p461_p8, %p460_p7 }
 0x253   :  { %p463_p10 = pnand %p462_p9, %p456_p6 }
 0x255   :  { %466 = shalt.err (!%p463_p10)
}
 0x256   :  { %328 = dma.vmem_to_hbm [thread:$0]  %s326_s11, 16, %s594_s9, [#allocation12]  }
 0x257   :  { %479 = dma.done.wait [#allocation7], 16  }
 0x258   :  { %480 = vsyncadd [#allocation7], 4294967280 }
 0x259   :  { %481 = dma.done.wait [#allocation12], 32  }
 0x25a   :  { %482 = vsyncadd [#allocation12], 4294967264 }
 0x25b   :  { %338 = vsyncpa [#allocation6], 1 }
 0x25c   :  { %339 = vsyncpa [#allocation9], 1 }
 0x25d   :  { %340 = vsyncpa [#allocation7], 1 }
 0x25e   :  { %341 = vsyncpa [#allocation12], 1 }

</bundles_post_ra>
